<compile_context>
chip_gen: v7x
topology: tpu7x:2x2x1
jax: 0.10.0
libtpu: 0.0.40
codegen_flags: <defaults>
</compile_context>

<pallas_src>
import jax
import jax.numpy as jnp
from jax.experimental import pallas as pl
from jax.experimental.pallas import tpu as pltpu


def _fusion_kernel(x_ref, w_ref, shift_ref, o_ref):
    # x_ref:     (1, C, TL)  one (batch, L-tile) block
    # w_ref:     (O, C)      conv weight with BN scale folded in (resident)
    # shift_ref: (O, 1)      BN shift: beta - mean * scale (resident)
    # o_ref:     (1, O, TL)
    x = x_ref[0]                                              # (C, TL)
    w = w_ref[...]                                            # (O, C)
    y = jnp.dot(w, x, preferred_element_type=jnp.float32)     # (O, TL) on MXU
    y = y + shift_ref[...]                                    # BN shift (bcast L)
    o_ref[0] = jnp.maximum(y, 0.0).astype(o_ref.dtype)        # ReLU


def _round_up(v, m):
    return ((v + m - 1) // m) * m


def _pick_l_tile(C, O, L, dtype_bytes=4, budget_bytes=16 << 20):
    """Largest 128-multiple L tile whose double-buffered in+out fits budget.

    budget is conservative so the same tile works on v5e/v6e (128 MiB VMEM)
    and v7x (64 MiB VMEM per TC)."""
    per_col = 2 * (C + O) * dtype_bytes           # 2x for double-buffering
    tl = (budget_bytes // per_col) // 128 * 128
    tl = max(128, min(tl, 8192))                  # cap: diminishing returns
    tl = min(tl, _round_up(L, 128))               # no bigger than padded L
    return tl


def concat_fusion_forward(x, weight, gamma, beta, running_mean, running_var,
                          eps=1e-5):
    """x: (N, C, L) float32.  weight: (O, C).  Returns (N, O, L) float32."""
    N, C, L = x.shape
    O = weight.shape[0]

    # ---- plain-JAX glue: fold eval-mode BN into weight + shift -------------
    scale = gamma / jnp.sqrt(running_var + eps)                      # (O,)
    w_folded = (weight * scale[:, None]).astype(jnp.float32)         # (O, C)
    shift = (beta - running_mean * scale).reshape(O, 1).astype(jnp.float32)

    # ---- L tiling: lane-dense 128-multiple tiles, pad tail -----------------
    TL = _pick_l_tile(C, O, L)
    L_pad = _round_up(L, TL)
    if L_pad != L:
        x_in = jnp.pad(x, ((0, 0), (0, 0), (0, L_pad - L)))
    else:
        x_in = x
    grid = (N, L_pad // TL)

    # VMEM actually needed: double-buffered x tile + out tile (+ tiny weights)
    tile_bytes = 2 * (C + O) * TL * 4 + (O * C + O) * 4
    vmem_limit = min(max(tile_bytes * 2, 8 << 20), 48 << 20)  # safe on v7x too

    cost = pl.CostEstimate(
        flops=2 * N * O * C * L_pad,
        bytes_accessed=4 * (N * C * L_pad + N * O * L_pad + O * C + O),
        transcendentals=0,
    )

    out = pl.pallas_call(
        _fusion_kernel,
        out_shape=jax.ShapeDtypeStruct((N, O, L_pad), x.dtype),
        grid_spec=pltpu.PrefetchScalarGridSpec(
            num_scalar_prefetch=0,
            grid=grid,
            in_specs=[
                pl.BlockSpec((1, C, TL), lambda n, l: (n, 0, l)),  # x tile
                pl.BlockSpec((O, C), lambda n, l: (0, 0)),         # folded W
                pl.BlockSpec((O, 1), lambda n, l: (0, 0)),         # BN shift
            ],
            out_specs=pl.BlockSpec((1, O, TL), lambda n, l: (n, 0, l)),
        ),
        compiler_params=pltpu.CompilerParams(
            dimension_semantics=("parallel", "parallel"),
            vmem_limit_bytes=vmem_limit,
        ),
        cost_estimate=cost,
    )(x_in, w_folded, shift)

    # Drop the padded tail (padded lanes were never meaningful).
    if L_pad != L:
        out = out[:, :, :L]
    return out


def reference_forward(x, weight, gamma, beta, running_mean, running_var,
                      eps=1e-5):
    # Pure-JAX reference: Conv1d(k=1, no bias) -> BN1d(eval) -> ReLU.
    y = jnp.einsum("oc,ncl->nol", weight, x)
    scale = gamma / jnp.sqrt(running_var + eps)
    shift = beta - running_mean * scale
    y = y * scale[None, :, None] + shift[None, :, None]
    return jnp.maximum(y, 0.0)


if __name__ == "__main__":
    key = jax.random.PRNGKey(0)
    N, C, L = 2, 4, 16          # batch, in_channels, sequence length
    O = C // 2                  # out_channels = in_channels // 2

    k_x, k_w, k_g, k_b, k_m, k_v = jax.random.split(key, 6)
    x = jax.random.normal(k_x, (N, C, L), dtype=jnp.float32)
    weight = jax.random.normal(k_w, (O, C), dtype=jnp.float32) * 0.1
    gamma = jax.random.uniform(k_g, (O,), minval=0.5, maxval=1.5,
                               dtype=jnp.float32)
    beta = jax.random.normal(k_b, (O,), dtype=jnp.float32) * 0.1
    running_mean = jax.random.normal(k_m, (O,), dtype=jnp.float32) * 0.1
    running_var = jax.random.uniform(k_v, (O,), minval=0.5, maxval=1.5,
                                     dtype=jnp.float32)

    out = concat_fusion_forward(x, weight, gamma, beta, running_mean,
                                running_var)
    out = jax.block_until_ready(out)

    ref = reference_forward(x, weight, gamma, beta, running_mean, running_var)
    assert out.shape == (N, O, L)
    assert jnp.allclose(out, ref, atol=1e-5, rtol=1e-5)

    print("KERNEL_OK")
</pallas_src>

<mosaic_0001>
module attributes {stable_mosaic.version = 11 : i64} {
  func.func @_fusion_kernel(%arg0: i32, %arg1: i32, %arg2: memref<1x4x128xf32, #tpu.memory_space<vmem>>, %arg3: memref<2x4xf32, #tpu.memory_space<vmem>>, %arg4: memref<2x1xf32, #tpu.memory_space<vmem>>, %arg5: memref<1x2x128xf32, #tpu.memory_space<vmem>>) attributes {dimension_semantics = [#tpu.dimension_semantics<parallel>, #tpu.dimension_semantics<parallel>], iteration_bounds = array<i64: 2, 1>, scalar_prefetch = 0 : i64, scratch_operands = 0 : i64, tpu.core_type = #tpu.core_type<tc>, window_params = [{transform_indices = @transform_0, window_bounds = array<i64: 1, 4, 128>}, {pipeline_mode = #tpu.pipeline_mode<synchronous>, transform_indices = @transform_1, window_bounds = array<i64: 2, 4>}, {pipeline_mode = #tpu.pipeline_mode<synchronous>, transform_indices = @transform_2, window_bounds = array<i64: 2, 1>}, {transform_indices = @transform_3, window_bounds = array<i64: 1, 2, 128>}]} {
    %c0 = arith.constant 0 : index
    %c0_0 = arith.constant 0 : index
    %c0_1 = arith.constant 0 : index
    %0 = vector.load %arg2[%c0, %c0_0, %c0_1] : memref<1x4x128xf32, #tpu.memory_space<vmem>>, vector<1x4x128xf32>
    %1 = vector.shape_cast %0 : vector<1x4x128xf32> to vector<4x128xf32>
    %c0_2 = arith.constant 0 : index
    %c0_3 = arith.constant 0 : index
    %2 = vector.load %arg3[%c0_2, %c0_3] : memref<2x4xf32, #tpu.memory_space<vmem>>, vector<2x4xf32>
    %cst = arith.constant dense<0.000000e+00> : vector<2x128xf32>
    %3 = tpu.matmul %2, %1, %cst {dimension_numbers = #tpu.dot_dimension_numbers<[1], [0], [0], [1], [0, 0, 1, 1], [], []>} : vector<2x4xf32>, vector<4x128xf32>, vector<2x128xf32> -> vector<2x128xf32>
    %c0_4 = arith.constant 0 : index
    %c0_5 = arith.constant 0 : index
    %4 = vector.load %arg4[%c0_4, %c0_5] : memref<2x1xf32, #tpu.memory_space<vmem>>, vector<2x1xf32>
    %5 = vector.broadcast %4 : vector<2x1xf32> to vector<2x128xf32>
    %6 = arith.addf %3, %5 : vector<2x128xf32>
    %cst_6 = arith.constant 0.000000e+00 : f32
    %7 = vector.broadcast %cst_6 : f32 to vector<2x128xf32>
    %8 = arith.maximumf %6, %7 : vector<2x128xf32>
    %c0_7 = arith.constant 0 : index
    %c0_8 = arith.constant 0 : index
    %c0_9 = arith.constant 0 : index
    %9 = vector.load %arg5[%c0_7, %c0_8, %c0_9] : memref<1x2x128xf32, #tpu.memory_space<vmem>>, vector<1x2x128xf32>
    %10 = vector.shape_cast %9 : vector<1x2x128xf32> to vector<2x128xf32>
    %11 = vector.shape_cast %8 : vector<2x128xf32> to vector<1x2x128xf32>
    tpu.vector_store %arg5[%c0_7, %c0_8, %c0_9], %11 {strides = array<i32>} : memref<1x2x128xf32, #tpu.memory_space<vmem>>, vector<1x2x128xf32>,
    return
  }
  func.func @transform_0(%arg0: i32, %arg1: i32) -> (i32, i32, i32) {
    %c0_i32 = arith.constant 0 : i32
    %c0_i32_0 = arith.constant 0 : i32
    return %arg0, %c0_i32, %arg1 : i32, i32, i32
  }
  func.func @transform_1(%arg0: i32, %arg1: i32) -> (i32, i32) {
    %c0_i32 = arith.constant 0 : i32
    %c0_i32_0 = arith.constant 0 : i32
    %c0_i32_1 = arith.constant 0 : i32
    return %c0_i32, %c0_i32_0 : i32, i32
  }
  func.func @transform_2(%arg0: i32, %arg1: i32) -> (i32, i32) {
    %c0_i32 = arith.constant 0 : i32
    %c0_i32_0 = arith.constant 0 : i32
    %c0_i32_1 = arith.constant 0 : i32
    return %c0_i32, %c0_i32_0 : i32, i32
  }
  func.func @transform_3(%arg0: i32, %arg1: i32) -> (i32, i32, i32) {
    %c0_i32 = arith.constant 0 : i32
    %c0_i32_0 = arith.constant 0 : i32
    return %arg0, %c0_i32, %arg1 : i32, i32, i32
  }
}

</mosaic_0001>

<bundles_post_ra>
// kernel: tpu_custom_call.1
= control target key start
LH: loop header
LB: loop body
LE: loop exit
PB: predicated region body
PF: predicated region fallthrough
CT: control target
= control target key end

     0   :  { %8 = vsyncpa [#allocation3], 0  ;;  %s792_s0 = inlined_call_operand.hbm [shape: f32[2,4,128], index: 0, kind: input, shape index: {}]   ;;  %s793_s1 = inlined_call_operand.vmem [shape: f32[2,4], index: 1, kind: input, shape index: {}]   ;;  %s794_s2 = inlined_call_operand.vmem [shape: f32[2,1], index: 2, kind: input, shape index: {}]   ;;  %s795_s3 = inlined_call_operand.hbm [shape: f32[2,2,128], index: 3, kind: output, shape index: {}]  }
   0x1   :  { %10 = vsyncpa [#allocation3 + $0x1], 0 }
   0x2   :  { %11 = vsyncpa [#allocation4], 0 }
   0x3   :  { %13 = vsyncpa [#allocation4 + $0x1], 0  ;;  %s613_s12 = smov 0   ;;  %s615_s13 = smov 0  }
   0x4   :  { %s617_s14 = smov 0   ;;  %s619_s15 = smov 0  }
   0x5   :  { %s621_s16 = smov 0   ;;  %s623_s17 = smov 0  }
   0x6 LB: > { %s386_s18 = sadd.s32 4294967295, %s586_s17   ;;  %s387_s19 = sadd.s32 4294967294, %s586_s17   ;;  %s586_s17 = sphi %s623_s17, %s19_s17   ;;  %s582_s16 = sphi %s621_s16, %s811_s16   ;;  %s578_s15 = sphi %s619_s15, %s810_s15   ;;  %s574_s14 = sphi %s617_s14, %s809_s14   ;;  %s570_s13 = sphi %s615_s13, %s808_s13   ;;  %s566_s12 = sphi %s613_s12, %s807_s12  }
   0x7   : > { %s31_s20 = sadd.s32 1, %s582_s16  ;;  %s40_s21 = sadd.s32 1, %s574_s14 }
   0x8   : > { %p33_p0 = scmp.ge.s32.totalorder %s31_s20, 2  ;;  %p47_p1 = scmp.ne.s32.totalorder %s574_s14, %s570_s13 }
   0x9   : > { %p48_p2 = scmp.eq.s32.totalorder %s586_s17, 0  ;;  %p53_p3 = scmp.ne.s32.totalorder %s570_s13, %s566_s12 }
   0xa   : > { %s813_s20 = smov (%p33_p0, %s31_s20), 0  ;;  %p54_p5 = scmp.eq.s32.totalorder %s386_s18, 0 }
   0xb   : > { %p654_p4 = por %p48_p2, %p47_p1  ;;  %s35_s23 = ssub.s32 %s582_s16, %s813_s20 }
   0xc   : > { %p121_p6 = scmp.eq.s32.totalorder %s386_s18, 1  ;;  %p38_p7 = scmp.eq.s32.totalorder %s35_s23, 0 }
   0xd   : > { %p660_p8 = por %p54_p5, %p53_p3  ;;  %p127_p10 = scmp.eq.s32.totalorder %s387_s19, 1 }
   0xe   : > { %p664_p9 = por %p121_p6, %p47_p1  ;;  %p420_p13 = scmp.lt.s32.totalorder %s586_s17, 2 }
   0xf   : > { %s669_s26 = scalar_select %p38_p7, %s574_s14, %s40_s21  }
  0x10   : > { %s799_s25 = scalar_select %p664_p9, 1, 0 }
  0x11   : > { %p671_p11 = por %p127_p10, %p53_p3  ;;  %s153_s28 = sand.u32 1, %s574_s14  }
  0x12   : > { %s390_s29 = sshll.u32 %s153_s28, 2  ;;  %s391_s30 = sshll.u32 %s582_s16, 6 }
  0x13   : > { %s800_s27 = scalar_select %p671_p11, 1, 0 }
  0x14   : > { %s682_s6 = scalar_lea.hbm %s792_s0, %s391_s30  ;;  %s157_s7 = scalar_lea.vmem [#allocation2], %s390_s29 }
  0x15   : > { %s165_s8 = sshll.u32 %s157_s7, 4  ;;  %p688_p0 = pnand %p420_p13, %p654_p4  ;;  %s684_s8 = int_to_ptr.vmem [resolvable:$true] %s165_s8 }
  0x16   : > { %s154_s10 = scalar_lea.sflag [#allocation3], %s153_s28  ;;  %s474_s11 = scalar_lea.hbm %s682_s6, 64 }
  0x17   : > { %p475_p3 = scmp.ne.s32.totalorder %s682_s6, %s474_s11  ;;  %p476_p5 = pneg %p688_p0 }
  0x18   : > { %s479_s21 = scalar_lea.hbm %s792_s0, 128  ;;  %p480_p4 = scmp.lt.u32.totalorder %s682_s6, %s792_s0 }
  0x19   : > { %p477_p6 = pnand %p476_p5, %p475_p3  ;;  %p481_p10 = scmp.lt.u32.totalorder %s479_s21, %s474_s11 }
  0x1a   : > { %p483_p12 = scmp.lt.u32.totalorder %s474_s11, %s682_s6 }
  0x1b   : > { %p478_p7 = pneg %p477_p6  ;;  %p482_p13 = por %p481_p10, %p480_p4 }
  0x1d   : > { %p484_p1 = por %p483_p12, %p482_p13 }
  0x1f   : > { %p485_p2 = pnand %p484_p1, %p478_p7 }
  0x21   : > { %488 = shalt.err (!%p485_p2)
}
  0x22   : > { %s489_s28 = scalar_lea.vmem %s684_s8, 64  ;;  %s588_s29 = smov [#allocation2]  }
  0x23   : > { %p490_p3 = scmp.ne.s32.totalorder %s684_s8, %s489_s28  ;;  %s494_s30 = sshll.u32 %s588_s29, 4  ;;  %s495_s30 = int_to_ptr.vmem [resolvable:$false] %s494_s30 }
  0x24   : > { %s496_s4 = scalar_lea.vmem %s495_s30, 128  ;;  %p497_p9 = scmp.lt.s32.totalorder %s684_s8, %s495_s30 }
  0x25   : > { %p492_p6 = pnand %p490_p3, %p476_p5  ;;  %p498_p4 = scmp.lt.s32.totalorder %s496_s4, %s489_s28 }
  0x27   : > { %p493_p11 = pneg %p492_p6  ;;  %p499_p10 = por %p498_p4, %p497_p9 }
  0x29   : > { %p500_p12 = pnand %p499_p10, %p493_p11 }
  0x2b   : > { %503 = shalt.err (!%p500_p12)
}
  0x2c   : > { %415 = dma.hbm_to_vmem [thread:$0]  (!%p688_p0), %s682_s6, 64, %s684_s8, %s154_s10  }
  0x2d   : > { %p802_p1 = scmp.lt.s32.totalorder %s586_s17, 3  ;;  %p803_p2 = scmp.ge.s32.totalorder %s586_s17, 1 }
  0x2f   : > { %p171_p5 = pnand %p803_p2, %p802_p1 }
  0x30   : > { %s724_s5 = sand.u32 (!%p171_p5), 1, %s570_s13  }
  0x31   : > { %174 = sbr.rel (%p171_p5) target bundleno = 290 (0x122), region = 32  ;;  %s393_s7 = sshll.u32 (!%p171_p5), %s724_s5, 2 }
  0x32   : > { %s177_s11 = scalar_lea.sflag (!%p171_p5), [#allocation3], %s724_s5  ;;  %s180_s18 = scalar_lea.vmem (!%p171_p5), [#allocation2], %s393_s7 }
  0x38   : > { %557 = dma.done.wait (%p660_p8), %s177_s11, 64  }
  0x39   : > { %559 = vsyncadd (%p660_p8), %s177_s11, 4294967232  ;;  %v589_v0 = vmov 0.0   ;;  %vm590_vm0 = vmmov 0   ;;  %v591_v1 = vmov 0   ;;  %vm215_vm1 = vcmask 1043456   ;;  %s394_s24 = sshll.u32 %s724_s5, 1 }
  0x3a   : > { %403 = vmatprep.subr.mxu0 %v589_v0  ;;  %405 = vmatprep.mubr.msk.f32.mxu0 %vm590_vm0, %v589_v0  ;;  %vm211_vm2 = vcmask 31744   ;;  %v203_v2 = vld [vmem:[%s180_s18] sm:$0xf]  ;;  %s398_s19 = sshll.u32 %s578_s15, 5  ;;  %s202_s21 = scalar_lea.vmem [#allocation5], %s394_s24 }
  0x3b   : > { %473 = vset.pattern.permute.xlu0 %v591_v1  ;;  %v204_v3 = vld [vmem:[%s793_s1] sm:$0x3]  ;;  %404 = vmatpush3.msk.msra.mxu0 %vm215_vm1, %v203_v2  ;;  %s306_s22 = sshll.u32 %s202_s21, 4  ;;  %s743_s29 = scalar_lea.hbm %s795_s3, %s398_s19  ;;  %s745_s22 = int_to_ptr.vmem [resolvable:$true] %s306_s22 }
  0x3c   : > { %v205_v4 = vld [vmem:[%s794_s2] sm:$0x3]  ;;  %406 = vmatmul.mubr.msk.f32.vlgmr.msra.gmra.mrb[0].mxu0 %vm211_vm2, %v204_v3  ;;  %s292_s30 = scalar_lea.sflag [#allocation4], %s724_s5  ;;  %s504_s4 = scalar_lea.vmem %s745_s22, 32 }
  0x3d   : > { %208 = vperm.xlu0 %473, %v205_v4   ;;  %p505_p8 = scmp.ne.s32.totalorder %s745_s22, %s504_s4  ;;  %p804_p9 = scmp.ne.s32.totalorder %s799_s25, 0 }
  0x3e   : > { %s592_s15 = smov [#allocation5]  }
  0x3f   : > { %p506_p11 = pnand %p505_p8, %p804_p9  ;;  %s508_s7 = sshll.u32 %s592_s15, 4  ;;  %s509_s7 = int_to_ptr.vmem [resolvable:$false] %s508_s7 }
  0x40   : > { %s510_s11 = scalar_lea.vmem %s509_s7, 64  ;;  %p511_p7 = scmp.lt.s32.totalorder %s745_s22, %s509_s7 }
  0x41   : > { %p507_p0 = pneg %p506_p11  ;;  %p512_p13 = scmp.lt.s32.totalorder %s510_s11, %s504_s4 }
  0x43   : > { %p513_p3 = por %p512_p13, %p511_p7 }
  0x45   : > { %p514_p6 = pnand %p513_p3, %p507_p0 }
  0xbc   : > { %v209_v5 = vpop.permute.xlu0 %208 }
 0x10f   : > { %v285_v6 = vpop.f32.mrb[0].mxu0 }
 0x110   : > { %v286_v7 = vadd.f32 %v285_v6, %v209_v5  ;;  %v407_v8 = vpop.f32.mrb[1].mxu0 }
 0x112   : > { %v289_v9 = vmax.f32 %v286_v7, 0.0 }
 0x114   : > { %290 = vst [vmem:[%s202_s21] sm:$0x3] %v289_v9 }
 0x115   : > { %517 = shalt.err (!%p514_p6)
}
 0x116   : > { %s518_s5 = scalar_lea.hbm %s743_s29, 32  ;;  %s522_s8 = scalar_lea.hbm %s795_s3, 64 }
 0x117   : > { %p519_p4 = scmp.ne.s32.totalorder %s743_s29, %s518_s5  ;;  %p523_p1 = scmp.lt.u32.totalorder %s743_s29, %s795_s3 }
 0x118   : > { %p524_p2 = scmp.lt.u32.totalorder %s522_s8, %s518_s5  ;;  %p526_p8 = scmp.lt.u32.totalorder %s518_s5, %s743_s29 }
 0x119   : > { %p520_p10 = pnand %p519_p4, %p804_p9 }
 0x11a   : > { %p525_p5 = por %p524_p2, %p523_p1 }
 0x11b   : > { %p521_p12 = pneg %p520_p10 }
 0x11c   : > { %p527_p11 = por %p526_p8, %p525_p5 }
 0x11e   : > { %p528_p0 = pnand %p527_p11, %p521_p12 }
 0x120   : > { %531 = shalt.err (!%p528_p0)
}
 0x121   : > { %410 = dma.vmem_to_hbm [thread:$0]  (%p804_p9), %s745_s22, 32, %s743_s29, %s292_s30  }
 0x122 PF: > { %s318_s24 = sand.u32 1, %s566_s12   ;;  %p805_p7 = scmp.ne.s32.totalorder %s800_s27, 0 }
 0x123   : > { %p806_p13 = scmp.ge.s32.totalorder %s586_s17, 2  ;;  %s319_s19 = scalar_lea.sflag [#allocation4], %s318_s24 }
 0x125   : > { %p417_p3 = pnand %p806_p13, %p805_p7 }
 0x127   : > { %561 = dma.done.wait (!%p417_p3), %s319_s19, 32  }
 0x128   : > { %563 = vsyncadd (!%p417_p3), %s319_s19, 4294967264  ;;  %s19_s17 = sadd.s32 1, %s586_s17   ;;  %s807_s12 = smov %s570_s13 }
 0x129   : > { %p16_p6 = scmp.ge.s32.totalorder %s19_s17, 4   ;;  %s808_s13 = smov %s574_s14 }
 0x12a   : > { %s809_s14 = smov %s669_s26  ;;  %s810_s15 = smov %s582_s16 }
 0x12b   : > { %s811_s16 = smov %s813_s20  ;;  %18 = sbr.rel (!%p16_p6) target bundleno = 6 (0x6), region = 77 }
 0x132   :  { %324 = vsyncpa [#allocation3], 1 }
 0x133   :  { %326 = vsyncpa [#allocation3 + $0x1], 1 }
 0x134   :  { %327 = vsyncpa [#allocation4], 1 }
 0x135   :  { %329 = vsyncpa [#allocation4 + $0x1], 1 }

</bundles_post_ra>
